<compile_context>
chip_gen: v5e
topology: v5e:2x2
jax: 0.10.0
libtpu: 0.0.40
codegen_flags: <defaults>
</compile_context>

<pallas_src>
import functools

import jax
import jax.numpy as jnp
from jax.experimental import pallas as pl
from jax.experimental.pallas import tpu as pltpu


def _round_up(x, m):
    return ((x + m - 1) // m) * m


def hyperfm_kernel(params_ref, emb_ref, csum_ref, out_ref, *, n_fields):
    """params_ref: SMEM (3,) = [beta, c, bias]
       emb_ref:    VMEM (F, D, TB)  -- batch on the lane axis
       csum_ref:   VMEM (1, TB)     -- precomputed sum of linear coefficients
       out_ref:    VMEM (1, TB)     -- lane-dense output slab
    """
    beta = params_ref[0]
    c = params_ref[1]
    bias = params_ref[2]

    # Upcast covers bf16-stored embedding tables (storage dtype can be halved
    # by the caller to cut HBM traffic; math stays in f32 for v5e safety).
    emb = emb_ref[...].astype(jnp.float32)          # (F, D, TB)

    n_pairs = n_fields * (n_fields - 1) // 2

    # All pairwise -ldot(u, v) values, stacked on the sublane axis so the
    # clamp + acosh run once on one dense (n_pairs, TB) slab (single EUP push
    # per transcendental instead of n_pairs nearly-empty ones).
    ds = []
    for i in range(n_fields):
        u = emb[i]                                  # (D, TB)
        for j in range(i + 1, n_fields):
            v = emb[j]                              # (D, TB)
            prod = u * v                            # (D, TB)
            # -ldot(u, v) = u0*v0 - sum_{k>=1} uk*vk = 2*u0*v0 - sum_k uk*vk
            ds.append(2.0 * prod[0:1, :] - jnp.sum(prod, axis=0, keepdims=True))
    d = jnp.maximum(jnp.concatenate(ds, axis=0), 1.0)            # (n_pairs, TB)

    # acosh(d) = log(d + sqrt((d-1)*(d+1)))  -- better conditioned than d*d-1.
    dist = jnp.log(d + jnp.sqrt((d - 1.0) * (d + 1.0)))          # (n_pairs, TB)

    # matching_layer == 'linear': beta and c hoisted out of the pair loop.
    inter = beta * jnp.sum(dist, axis=0, keepdims=True) + c * float(n_pairs)
    out_ref[...] = inter + csum_ref[...] + bias                  # (1, TB)


def hyperfm_forward(features, emb_table, coeff_table, beta, c, bias, *, tile_b=1024):
    """features: (B, F) int32; emb_table: (n_features, 1+embedding_dim);
       coeff_table: (n_features, 1).  Returns (B,) float32."""
    B, F = features.shape
    D = emb_table.shape[-1]

    # --- glue (plain JAX): gathers, coeff pre-reduction, batch-major layout ---
    emb = emb_table[features]                                     # (B, F, D)
    coeff_sum = jnp.sum(coeff_table[features][..., 0].astype(jnp.float32),
                        axis=-1)                                  # (B,)

    # Batch on the lane (last) axis -> full vreg utilization, lane-dense output.
    emb_t = jnp.transpose(emb, (1, 2, 0))                         # (F, D, B)

    # Large, lane-aligned batch tiles; pad B up to a tile multiple.
    tile_b = max(128, min(tile_b, _round_up(B, 128)))
    Bp = _round_up(B, tile_b)
    if Bp != B:
        emb_t = jnp.pad(emb_t, ((0, 0), (0, 0), (0, Bp - B)))
        coeff_sum = jnp.pad(coeff_sum, (0, Bp - B))
    csum = coeff_sum.reshape(1, Bp)

    params = jnp.array([beta, c, bias], jnp.float32)

    kernel = functools.partial(hyperfm_kernel, n_fields=F)
    out = pl.pallas_call(
        kernel,
        out_shape=jax.ShapeDtypeStruct((1, Bp), jnp.float32),
        grid_spec=pltpu.PrefetchScalarGridSpec(
            num_scalar_prefetch=0,
            grid=(Bp // tile_b,),
            in_specs=[
                pl.BlockSpec(memory_space=pltpu.MemorySpace.SMEM),      # params
                pl.BlockSpec((F, D, tile_b), lambda b: (0, 0, b)),      # emb (F,D,B)
                pl.BlockSpec((1, tile_b), lambda b: (0, b)),            # coeff sum
            ],
            out_specs=pl.BlockSpec((1, tile_b), lambda b: (0, b)),
        ),
        compiler_params=pltpu.CompilerParams(
            dimension_semantics=("parallel",)),
    )(params, emb_t, csum)
    return out[0, :B]


def hyperfm_reference(features, emb_table, coeff_table, beta, c, bias):
    """Pure-JAX reference mirroring the PyTorch forward."""
    emb = emb_table[features].astype(jnp.float32)                 # (B, F, D)
    coeff = coeff_table[features][..., 0].astype(jnp.float32)     # (B, F)
    _, F, _ = emb.shape
    dists = []
    for i in range(F):
        for j in range(i + 1, F):
            u, v = emb[:, i, :], emb[:, j, :]
            d = u[:, 0] * v[:, 0] - jnp.sum(u[:, 1:] * v[:, 1:], axis=-1)
            d = jnp.maximum(d, 1.0)
            dists.append(jnp.log(d + jnp.sqrt((d - 1.0) * (d + 1.0))))
    inter = jnp.sum(jnp.stack(dists, axis=1) * beta + c, axis=1)
    return inter + jnp.sum(coeff, axis=1) + bias


if __name__ == "__main__":
    key = jax.random.PRNGKey(0)
    n_features, n_fields, embedding_dim = 32, 4, 10
    batch_size = 16
    D = 1 + embedding_dim

    k_emb, k_coeff, k_feat = jax.random.split(key, 3)

    # Module init uses U(-0.001, 0.001); the demo uses a wider U(-0.1, 0.1) so
    # acosh is well-conditioned and the numerical check is meaningful, then
    # projects onto the hyperboloid exactly like project_embedding():
    # first component = sqrt(1 + ||spatial||^2).
    w = jax.random.uniform(k_emb, (n_features, D), jnp.float32, -0.1, 0.1)
    x0 = jnp.sqrt(1.0 + jnp.sum(w[:, 1:] ** 2, axis=-1, keepdims=True))
    emb_table = jnp.concatenate([x0, w[:, 1:]], axis=-1)

    # feature_coeff.weight ~ N(0, 0.001^2)
    coeff_table = 0.001 * jax.random.normal(k_coeff, (n_features, 1), jnp.float32)

    # Module __init__ zeros beta / c / bias; use nonzero values so the linear
    # matching layer is actually exercised.
    beta, c, bias = 0.5, 0.1, 0.05

    features = jax.random.randint(k_feat, (batch_size, n_fields), 0, n_features,
                                  dtype=jnp.int32)

    out = hyperfm_forward(features, emb_table, coeff_table, beta, c, bias)
    out = jax.block_until_ready(out)

    ref = hyperfm_reference(features, emb_table, coeff_table, beta, c, bias)
    assert out.shape == (batch_size,)
    assert jnp.allclose(out, ref, atol=1e-4, rtol=1e-4), (out, ref)
    print("KERNEL_OK")
</pallas_src>

<mosaic_0001>
module attributes {stable_mosaic.version = 11 : i64} {
  func.func @hyperfm_kernel(%arg0: i32, %arg1: memref<3xf32, #tpu.memory_space<smem>>, %arg2: memref<4x11x128xf32, #tpu.memory_space<vmem>>, %arg3: memref<1x128xf32, #tpu.memory_space<vmem>>, %arg4: memref<1x128xf32, #tpu.memory_space<vmem>>) attributes {dimension_semantics = [#tpu.dimension_semantics<parallel>], iteration_bounds = array<i64: 1>, scalar_prefetch = 0 : i64, scratch_operands = 0 : i64, tpu.core_type = #tpu.core_type<tc>, window_params = [{transform_indices = @transform_0, window_bounds = array<i64: 3>}, {transform_indices = @transform_1, window_bounds = array<i64: 4, 11, 128>}, {transform_indices = @transform_2, window_bounds = array<i64: 1, 128>}, {transform_indices = @transform_3, window_bounds = array<i64: 1, 128>}]} {
    %c0 = arith.constant 0 : index
    %0 = memref.load %arg1[%c0] : memref<3xf32, #tpu.memory_space<smem>>
    %c1 = arith.constant 1 : index
    %1 = memref.load %arg1[%c1] : memref<3xf32, #tpu.memory_space<smem>>
    %c2 = arith.constant 2 : index
    %2 = memref.load %arg1[%c2] : memref<3xf32, #tpu.memory_space<smem>>
    %c0_0 = arith.constant 0 : index
    %c0_1 = arith.constant 0 : index
    %c0_2 = arith.constant 0 : index
    %3 = vector.load %arg2[%c0_0, %c0_1, %c0_2] : memref<4x11x128xf32, #tpu.memory_space<vmem>>, vector<4x11x128xf32>
    %4 = vector.extract_strided_slice %3 {offsets = [0, 0, 0], sizes = [1, 11, 128], strides = [1, 1, 1]} : vector<4x11x128xf32> to vector<1x11x128xf32>
    %5 = vector.shape_cast %4 : vector<1x11x128xf32> to vector<11x128xf32>
    %6 = vector.extract_strided_slice %3 {offsets = [1, 0, 0], sizes = [1, 11, 128], strides = [1, 1, 1]} : vector<4x11x128xf32> to vector<1x11x128xf32>
    %7 = vector.shape_cast %6 : vector<1x11x128xf32> to vector<11x128xf32>
    %8 = arith.mulf %5, %7 : vector<11x128xf32>
    %9 = vector.extract_strided_slice %8 {offsets = [0, 0], sizes = [1, 128], strides = [1, 1]} : vector<11x128xf32> to vector<1x128xf32>
    %cst = arith.constant 2.000000e+00 : f32
    %10 = vector.broadcast %cst : f32 to vector<1x128xf32>
    %11 = arith.mulf %10, %9 : vector<1x128xf32>
    %cst_3 = arith.constant dense<0.000000e+00> : vector<128xf32>
    %12 = vector.multi_reduction <add>, %8, %cst_3 [0] : vector<11x128xf32> to vector<128xf32>
    %13 = vector.shape_cast %12 : vector<128xf32> to vector<1x128xf32>
    %14 = arith.subf %11, %13 : vector<1x128xf32>
    %15 = vector.extract_strided_slice %3 {offsets = [2, 0, 0], sizes = [1, 11, 128], strides = [1, 1, 1]} : vector<4x11x128xf32> to vector<1x11x128xf32>
    %16 = vector.shape_cast %15 : vector<1x11x128xf32> to vector<11x128xf32>
    %17 = arith.mulf %5, %16 : vector<11x128xf32>
    %18 = vector.extract_strided_slice %17 {offsets = [0, 0], sizes = [1, 128], strides = [1, 1]} : vector<11x128xf32> to vector<1x128xf32>
    %cst_4 = arith.constant 2.000000e+00 : f32
    %19 = vector.broadcast %cst_4 : f32 to vector<1x128xf32>
    %20 = arith.mulf %19, %18 : vector<1x128xf32>
    %cst_5 = arith.constant dense<0.000000e+00> : vector<128xf32>
    %21 = vector.multi_reduction <add>, %17, %cst_5 [0] : vector<11x128xf32> to vector<128xf32>
    %22 = vector.shape_cast %21 : vector<128xf32> to vector<1x128xf32>
    %23 = arith.subf %20, %22 : vector<1x128xf32>
    %24 = vector.extract_strided_slice %3 {offsets = [3, 0, 0], sizes = [1, 11, 128], strides = [1, 1, 1]} : vector<4x11x128xf32> to vector<1x11x128xf32>
    %25 = vector.shape_cast %24 : vector<1x11x128xf32> to vector<11x128xf32>
    %26 = arith.mulf %5, %25 : vector<11x128xf32>
    %27 = vector.extract_strided_slice %26 {offsets = [0, 0], sizes = [1, 128], strides = [1, 1]} : vector<11x128xf32> to vector<1x128xf32>
    %cst_6 = arith.constant 2.000000e+00 : f32
    %28 = vector.broadcast %cst_6 : f32 to vector<1x128xf32>
    %29 = arith.mulf %28, %27 : vector<1x128xf32>
    %cst_7 = arith.constant dense<0.000000e+00> : vector<128xf32>
    %30 = vector.multi_reduction <add>, %26, %cst_7 [0] : vector<11x128xf32> to vector<128xf32>
    %31 = vector.shape_cast %30 : vector<128xf32> to vector<1x128xf32>
    %32 = arith.subf %29, %31 : vector<1x128xf32>
    %33 = vector.extract_strided_slice %3 {offsets = [1, 0, 0], sizes = [1, 11, 128], strides = [1, 1, 1]} : vector<4x11x128xf32> to vector<1x11x128xf32>
    %34 = vector.shape_cast %33 : vector<1x11x128xf32> to vector<11x128xf32>
    %35 = vector.extract_strided_slice %3 {offsets = [2, 0, 0], sizes = [1, 11, 128], strides = [1, 1, 1]} : vector<4x11x128xf32> to vector<1x11x128xf32>
    %36 = vector.shape_cast %35 : vector<1x11x128xf32> to vector<11x128xf32>
    %37 = arith.mulf %34, %36 : vector<11x128xf32>
    %38 = vector.extract_strided_slice %37 {offsets = [0, 0], sizes = [1, 128], strides = [1, 1]} : vector<11x128xf32> to vector<1x128xf32>
    %cst_8 = arith.constant 2.000000e+00 : f32
    %39 = vector.broadcast %cst_8 : f32 to vector<1x128xf32>
    %40 = arith.mulf %39, %38 : vector<1x128xf32>
    %cst_9 = arith.constant dense<0.000000e+00> : vector<128xf32>
    %41 = vector.multi_reduction <add>, %37, %cst_9 [0] : vector<11x128xf32> to vector<128xf32>
    %42 = vector.shape_cast %41 : vector<128xf32> to vector<1x128xf32>
    %43 = arith.subf %40, %42 : vector<1x128xf32>
    %44 = vector.extract_strided_slice %3 {offsets = [3, 0, 0], sizes = [1, 11, 128], strides = [1, 1, 1]} : vector<4x11x128xf32> to vector<1x11x128xf32>
    %45 = vector.shape_cast %44 : vector<1x11x128xf32> to vector<11x128xf32>
    %46 = arith.mulf %34, %45 : vector<11x128xf32>
    %47 = vector.extract_strided_slice %46 {offsets = [0, 0], sizes = [1, 128], strides = [1, 1]} : vector<11x128xf32> to vector<1x128xf32>
    %cst_10 = arith.constant 2.000000e+00 : f32
    %48 = vector.broadcast %cst_10 : f32 to vector<1x128xf32>
    %49 = arith.mulf %48, %47 : vector<1x128xf32>
    %cst_11 = arith.constant dense<0.000000e+00> : vector<128xf32>
    %50 = vector.multi_reduction <add>, %46, %cst_11 [0] : vector<11x128xf32> to vector<128xf32>
    %51 = vector.shape_cast %50 : vector<128xf32> to vector<1x128xf32>
    %52 = arith.subf %49, %51 : vector<1x128xf32>
    %53 = vector.extract_strided_slice %3 {offsets = [2, 0, 0], sizes = [1, 11, 128], strides = [1, 1, 1]} : vector<4x11x128xf32> to vector<1x11x128xf32>
    %54 = vector.shape_cast %53 : vector<1x11x128xf32> to vector<11x128xf32>
    %55 = vector.extract_strided_slice %3 {offsets = [3, 0, 0], sizes = [1, 11, 128], strides = [1, 1, 1]} : vector<4x11x128xf32> to vector<1x11x128xf32>
    %56 = vector.shape_cast %55 : vector<1x11x128xf32> to vector<11x128xf32>
    %57 = arith.mulf %54, %56 : vector<11x128xf32>
    %58 = vector.extract_strided_slice %57 {offsets = [0, 0], sizes = [1, 128], strides = [1, 1]} : vector<11x128xf32> to vector<1x128xf32>
    %cst_12 = arith.constant 2.000000e+00 : f32
    %59 = vector.broadcast %cst_12 : f32 to vector<1x128xf32>
    %60 = arith.mulf %59, %58 : vector<1x128xf32>
    %cst_13 = arith.constant dense<0.000000e+00> : vector<128xf32>
    %61 = vector.multi_reduction <add>, %57, %cst_13 [0] : vector<11x128xf32> to vector<128xf32>
    %62 = vector.shape_cast %61 : vector<128xf32> to vector<1x128xf32>
    %63 = arith.subf %60, %62 : vector<1x128xf32>
    %64 = tpu.concatenate %14, %23, %32, %43, %52, %63 in 0 : vector<1x128xf32>, vector<1x128xf32>, vector<1x128xf32>, vector<1x128xf32>, vector<1x128xf32>, vector<1x128xf32> -> vector<6x128xf32>
    %cst_14 = arith.constant 1.000000e+00 : f32
    %65 = vector.broadcast %cst_14 : f32 to vector<6x128xf32>
    %66 = arith.maximumf %64, %65 : vector<6x128xf32>
    %cst_15 = arith.constant 1.000000e+00 : f32
    %67 = vector.broadcast %cst_15 : f32 to vector<6x128xf32>
    %68 = arith.subf %66, %67 : vector<6x128xf32>
    %cst_16 = arith.constant 1.000000e+00 : f32
    %69 = vector.broadcast %cst_16 : f32 to vector<6x128xf32>
    %70 = arith.addf %66, %69 : vector<6x128xf32>
    %71 = arith.mulf %68, %70 : vector<6x128xf32>
    %72 = math.sqrt %71 : vector<6x128xf32>
    %73 = arith.addf %66, %72 : vector<6x128xf32>
    %74 = math.log %73 : vector<6x128xf32>
    %cst_17 = arith.constant dense<0.000000e+00> : vector<128xf32>
    %75 = vector.multi_reduction <add>, %74, %cst_17 [0] : vector<6x128xf32> to vector<128xf32>
    %76 = vector.shape_cast %75 : vector<128xf32> to vector<1x128xf32>
    %77 = vector.broadcast %0 : f32 to vector<1x128xf32>
    %78 = arith.mulf %77, %76 : vector<1x128xf32>
    %cst_18 = arith.constant 6.000000e+00 : f32
    %79 = arith.mulf %1, %cst_18 : f32
    %80 = vector.broadcast %79 : f32 to vector<1x128xf32>
    %81 = arith.addf %78, %80 : vector<1x128xf32>
    %c0_19 = arith.constant 0 : index
    %c0_20 = arith.constant 0 : index
    %82 = vector.load %arg3[%c0_19, %c0_20] : memref<1x128xf32, #tpu.memory_space<vmem>>, vector<1x128xf32>
    %83 = arith.addf %81, %82 : vector<1x128xf32>
    %84 = vector.broadcast %2 : f32 to vector<1x128xf32>
    %85 = arith.addf %83, %84 : vector<1x128xf32>
    %c0_21 = arith.constant 0 : index
    %c0_22 = arith.constant 0 : index
    %86 = vector.load %arg4[%c0_21, %c0_22] : memref<1x128xf32, #tpu.memory_space<vmem>>, vector<1x128xf32>
    tpu.vector_store %arg4[%c0_21, %c0_22], %85 {strides = array<i32>} : memref<1x128xf32, #tpu.memory_space<vmem>>, vector<1x128xf32>,
    return
  }
  func.func @transform_0(%arg0: i32) -> i32 {
    %c0_i32 = arith.constant 0 : i32
    %c0_i32_0 = arith.constant 0 : i32
    return %c0_i32 : i32
  }
  func.func @transform_1(%arg0: i32) -> (i32, i32, i32) {
    %c0_i32 = arith.constant 0 : i32
    %c0_i32_0 = arith.constant 0 : i32
    %c0_i32_1 = arith.constant 0 : i32
    return %c0_i32, %c0_i32_0, %arg0 : i32, i32, i32
  }
  func.func @transform_2(%arg0: i32) -> (i32, i32) {
    %c0_i32 = arith.constant 0 : i32
    %c0_i32_0 = arith.constant 0 : i32
    return %c0_i32, %arg0 : i32, i32
  }
  func.func @transform_3(%arg0: i32) -> (i32, i32) {
    %c0_i32 = arith.constant 0 : i32
    %c0_i32_0 = arith.constant 0 : i32
    return %c0_i32, %arg0 : i32, i32
  }
}

</mosaic_0001>

<bundles_post_ra>
// kernel: tpu_custom_call.1
= control target key start
LH: loop header
LB: loop body
LE: loop exit
PB: predicated region body
PF: predicated region fallthrough
CT: control target
= control target key end

     0   :  { %8 = vsyncpa [#allocation4], 0  ;;  %s301_s0 = inlined_call_operand.vmem [shape: f32[3], index: 0, kind: input, shape index: {}]   ;;  %s302_s1 = inlined_call_operand.vmem [shape: f32[4,11,128], index: 1, kind: input, shape index: {}]   ;;  %s303_s2 = inlined_call_operand.vmem [shape: f32[1,128], index: 2, kind: input, shape index: {}]   ;;  %s304_s3 = inlined_call_operand.hbm [shape: f32[1,128], index: 3, kind: output, shape index: {}]  }
   0x1   :  { %9 = vsyncpa [#allocation3], 0  ;;  %s15_s14 = sshll.u32 %s301_s0, 4  ;;  %s239_s15 = smov [#allocation2]   ;;  %s16_s14 = int_to_ptr.vmem [resolvable:$true] %s15_s14 }
   0x2   :  { %18 = dma.vmem_to_smem %s16_s14, 16, %s239_s15, [#allocation4]  }
   0x3   :  { %235 = dma.done.wait [#allocation4], 16  }
   0x4   :  { %236 = vsyncadd [#allocation4], 4294967280 }
   0x5   :  { %27 = sfence }
   0x6   :  { %v31_v0 = vld [vmem:[%s302_s1] sm:$0xff]  ;;  %v32_v1 = vld [vmem:[%s302_s1 + $0x8] sm:$0x7]  ;;  %v33_v2 = vld [vmem:[%s302_s1 + $0x10] sm:$0xff]  ;;  %vm42_vm0 = vcmask 1042432   ;;  %vm127_vm1 = vcmask 1040384  }
   0x7   :  { %v34_v3 = vld [vmem:[%s302_s1 + $0x18] sm:$0x7]  ;;  %v35_v4 = vld [vmem:[%s302_s1 + $0x20] sm:$0xff]  ;;  %v37_v5 = vld [vmem:[%s302_s1 + $0x30] sm:$0xff]  ;;  %v39_v6 = vmul.f32 %v33_v2, %v31_v0  ;;  %vm129_vm2 = vcmask 1041408   ;;  %vm132_vm3 = vcmask 1043456  }
   0x8   :  { %v36_v7 = vld [vmem:[%s302_s1 + $0x28] sm:$0x7]  ;;  %v38_v8 = vld [vmem:[%s302_s1 + $0x38] sm:$0x7]  ;;  %v40_v9 = vmul.f32 %v34_v3, %v32_v1  ;;  %v52_v10 = vmul.f32 %v35_v4, %v31_v0  ;;  %v64_v11 = vmul.f32 %v37_v5, %v31_v0  ;;  %v76_v14 = vmul.f32 %v35_v4, %v33_v2  ;;  %s190_s1 = sld [smem:[#allocation2 + $0x1]]  ;;  %s240_s9 = smov [#allocation5]  }
   0x9   :  { %v53_v12 = vmul.f32 %v36_v7, %v32_v1  ;;  %v65_v13 = vmul.f32 %v38_v8, %v32_v1  ;;  %v77_v16 = vmul.f32 %v36_v7, %v34_v3  ;;  %v88_v23 = vmul.f32 %v37_v5, %v33_v2  ;;  %s28_s4 = sld [smem:[#allocation2]]  ;;  %s178_s10 = sshll.u32 %s240_s9, 4  ;;  %s179_s10 = int_to_ptr.vmem [resolvable:$true] %s178_s10 }
   0xa   :  { %v43_v15 = vsel %vm42_vm0, %v40_v9, 0.0  ;;  %v89_v26 = vmul.f32 %v38_v8, %v34_v3  ;;  %v100_v27 = vmul.f32 %v37_v5, %v35_v4  ;;  %v101_v30 = vmul.f32 %v38_v8, %v36_v7  ;;  %s191_s5 = sld [smem:[#allocation2 + $0x2]]  ;;  %s180_s13 = sshll.u32 %s304_s3, 4  ;;  %s181_s13 = int_to_ptr.hbm [resolvable:$true] %s180_s13 }
   0xb   :  { %v44_v17 = vadd.f32 %v43_v15, %v39_v6  ;;  %v55_v18 = vsel %vm42_vm0, %v53_v12, 0.0  ;;  %v67_v19 = vsel %vm42_vm0, %v65_v13, 0.0  ;;  %v79_v22 = vsel %vm42_vm0, %v77_v16, 0.0 }
   0xc   :  { %v56_v20 = vadd.f32 %v55_v18, %v52_v10  ;;  %v68_v21 = vadd.f32 %v67_v19, %v64_v11  ;;  %v80_v25 = vadd.f32 %v79_v22, %v76_v14  ;;  %v91_v33 = vsel %vm42_vm0, %v89_v26, 0.0 }
   0xd   :  { %v45_v24 = vrot.slane %v44_v17, 4  ;;  %v92_v36 = vadd.f32 %v91_v33, %v88_v23  ;;  %v103_v37 = vsel %vm42_vm0, %v101_v30, 0.0  ;;  %v41_v47 = vmul.f32 2.0, %v39_v6 }
   0xe   :  { %v57_v28 = vrot.slane %v56_v20, 4  ;;  %v69_v29 = vrot.slane %v68_v21, 4  ;;  %v81_v32 = vrot.slane %v80_v25, 4  ;;  %v104_v40 = vadd.f32 %v103_v37, %v100_v27  ;;  %s165_s6 = smul.f32 6.0, %s190_s1 }
   0xf   :  { %v46_v31 = vadd.f32 %v45_v24, %v44_v17  ;;  %v93_v43 = vrot.slane %v92_v36, 4  ;;  %v54_v52 = vmul.f32 2.0, %v52_v10  ;;  %v66_v56 = vmul.f32 2.0, %v64_v11 }
  0x10   :  { %v58_v34 = vadd.f32 %v57_v28, %v56_v20  ;;  %v70_v35 = vadd.f32 %v69_v29, %v68_v21  ;;  %v82_v39 = vadd.f32 %v81_v32, %v80_v25  ;;  %v105_v46 = vrot.slane %v104_v40, 4 }
  0x11   :  { %v47_v38 = vrot.slane %v46_v31, 2  ;;  %v94_v50 = vadd.f32 %v93_v43, %v92_v36  ;;  %v78_v60 = vmul.f32 2.0, %v76_v14  ;;  %v90_v3 = vmul.f32 2.0, %v88_v23 }
  0x12   :  { %v59_v41 = vrot.slane %v58_v34, 2  ;;  %v71_v42 = vrot.slane %v70_v35, 2  ;;  %v83_v45 = vrot.slane %v82_v39, 2  ;;  %v106_v54 = vadd.f32 %v105_v46, %v104_v40 }
  0x13   :  { %v48_v44 = vadd.f32 %v47_v38, %v46_v31  ;;  %v95_v58 = vrot.slane %v94_v50, 2  ;;  %v102_v10 = vmul.f32 2.0, %v100_v27  ;;  %vm134_vm4 = vcmask 1044480  }
  0x14   :  { %v60_v48 = vadd.f32 %v59_v41, %v58_v34  ;;  %v72_v49 = vadd.f32 %v71_v42, %v70_v35  ;;  %v84_v53 = vadd.f32 %v83_v45, %v82_v39  ;;  %v107_v62 = vrot.slane %v106_v54, 2 }
  0x15   :  { %v49_v51 = vrot.slane %v48_v44, 1  ;;  %v96_v1 = vadd.f32 %v95_v58, %v94_v50  ;;  %vm155_vm7 = vcmask 1045504  }
  0x16   :  { %v61_v55 = vrot.slane %v60_v48, 1  ;;  %v73_v57 = vrot.slane %v72_v49, 1  ;;  %v85_v61 = vrot.slane %v84_v53, 1  ;;  %v108_v4 = vadd.f32 %v107_v62, %v106_v54 }
  0x17   :  { %v50_v59 = vadd.f32 %v49_v51, %v48_v44  ;;  %v97_v8 = vrot.slane %v96_v1, 1  ;;  %v166_v51 = vstv %s165_s6 }
  0x18   :  { %v62_v63 = vadd.f32 %v61_v55, %v60_v48  ;;  %v74_v0 = vadd.f32 %v73_v57, %v72_v49  ;;  %v86_v2 = vadd.f32 %v85_v61, %v84_v53  ;;  %v109_v12 = vrot.slane %v108_v4, 1  ;;  %v168_v53 = vld [vmem:[%s303_s2] sm:$0x1] }
  0x19   :  { %v51_v5 = vsub.f32 %v41_v47, %v50_v59  ;;  %v98_v11 = vadd.f32 %v97_v8, %v96_v1  ;;  %v163_v49 = vstv %s28_s4  ;;  %v170_v55 = vstv %s191_s5 }
  0x1a   :  { %v63_v6 = vsub.f32 %v54_v52, %v62_v63  ;;  %v75_v7 = vsub.f32 %v66_v56, %v74_v0  ;;  %v87_v9 = vsub.f32 %v78_v60, %v86_v2  ;;  %v110_v14 = vadd.f32 %v109_v12, %v108_v4 }
  0x1b   :  { %v99_v17 = vsub.f32 %v90_v3, %v98_v11 }
  0x1c   :  { %v113_v13 = vrot.slane %v63_v6, 7  ;;  %v116_v15 = vrot.slane %v75_v7, 6  ;;  %v119_v16 = vrot.slane %v87_v9, 5  ;;  %v111_v19 = vsub.f32 %v102_v10, %v110_v14 }
  0x1d   :  { %v122_v21 = vrot.slane %v99_v17, 4 }
  0x1e   :  { %v128_v18 = vsel %vm127_vm1, %v51_v5, %v113_v13  ;;  %v125_v23 = vrot.slane %v111_v19, 3 }
  0x1f   :  { %v130_v20 = vsel %vm129_vm2, %v128_v18, %v116_v15 }
  0x20   :  { %v131_v22 = vsel %vm42_vm0, %v130_v20, %v119_v16 }
  0x21   :  { %v133_v24 = vsel %vm132_vm3, %v131_v22, %v122_v21 }
  0x22   :  { %v135_v25 = vsel %vm134_vm4, %v133_v24, %v125_v23 }
  0x23   :  { %v136_v26 = vmax.f32 %v135_v25, 1.0 }
  0x25   :  { %v192_v27 = vadd.f32 -1.0, %v136_v26  ;;  %v138_v28 = vadd.f32 1.0, %v136_v26 }
  0x27   :  { %v139_v29 = vmul.f32 %v192_v27, %v138_v28 }
  0x29   :  { %195 = vrsqrt.f32 %v139_v29  ;;  %vm147_vm5 = vcmp.eq.f32.partialorder %v139_v29, inf  ;;  %v150_v36 = vand.u32 2147483648, %v139_v29  ;;  %vm149_vm6 = vcmp.eq.f32.partialorder %v139_v29, 0.0 }
  0x2f   :  { %v196_v30 = vpop.eup %195 }
  0x30   :  { %v141_v31 = vmul.f32 %v196_v30, %v139_v29 }
  0x32   :  { %v142_v32 = vmul.f32 %v196_v30, %v141_v31 }
  0x34   :  { %v143_v33 = vmul.f32 0.5, %v142_v32 }
  0x36   :  { %v144_v34 = vsub.f32 1.5, %v143_v33 }
  0x38   :  { %v145_v35 = vmul.f32 %v196_v30, %v144_v34 }
  0x3a   :  { %v146_v37 = vmul.f32 %v145_v35, %v139_v29 }
  0x3c   :  { %v148_v38 = vsel %vm147_vm5, %v139_v29, %v146_v37 }
  0x3d   :  { %v151_v39 = vsel %vm149_vm6, %v150_v36, %v148_v38 }
  0x3e   :  { %v152_v40 = vadd.f32 %v151_v39, %v136_v26 }
  0x40   :  { %197 = vlog2.f32 %v152_v40 }
  0x46   :  { %v198_v41 = vpop.eup %197 }
  0x47   :  { %v154_v42 = vmul.f32 0.6931472, %v198_v41 }
  0x49   :  { %v156_v43 = vsel %vm155_vm7, %v154_v42, 0.0 }
  0x4a   :  { %v157_v44 = vrot.slane %v156_v43, 4 }
  0x4c   :  { %v158_v45 = vadd.f32 %v157_v44, %v156_v43 }
  0x4e   :  { %v159_v46 = vrot.slane %v158_v45, 2 }
  0x50   :  { %v160_v47 = vadd.f32 %v159_v46, %v158_v45 }
  0x52   :  { %v161_v48 = vrot.slane %v160_v47, 1 }
  0x54   :  { %v162_v50 = vadd.f32 %v161_v48, %v160_v47 }
  0x56   :  { %v164_v52 = vmul.f32 %v163_v49, %v162_v50 }
  0x58   :  { %v167_v54 = vadd.f32 %v166_v51, %v164_v52 }
  0x5a   :  { %v169_v56 = vadd.f32 %v168_v53, %v167_v54 }
  0x5c   :  { %v171_v57 = vadd.f32 %v170_v55, %v169_v56 }
  0x5e   :  { %172 = vst [vmem:[#allocation5] sm:$0x1] %v171_v57 }
  0x5f   :  { %183 = dma.vmem_to_hbm [thread:$0]  %s179_s10, 16, %s181_s13, [#allocation3]  }
  0x60   :  { %237 = dma.done.wait [#allocation3], 16  }
  0x61   :  { %238 = vsyncadd [#allocation3], 4294967280 }
  0x62   :  { %188 = vsyncpa [#allocation3], 1 }
  0x63   :  { %189 = vsyncpa [#allocation4], 1 }

</bundles_post_ra>
